<compile_context>
chip_gen: v7x
topology: tpu7x:2x2x1
jax: 0.10.0
libtpu: 0.0.40
codegen_flags: <defaults>
</compile_context>

<pallas_src>
import functools

import jax
import jax.numpy as jnp
import numpy as np
from jax import lax
from jax.experimental import pallas as pl
from jax.experimental.pallas import tpu as pltpu

_LANE = 128
_BLOCK_ROWS = 8192   # 8192 * 128 * 4 B = 4 MiB per f32 input block
_NUM_CORES = 2       # v7x has 2 TensorCores/chip; extra axis is harmless on v5e/v6e


def _mse_kernel(r_ref, t_ref, out_ref, acc_ref, *, tb, blocks_per_core,
                full_rows, rem):
    c = pl.program_id(0)   # core ("parallel") axis
    i = pl.program_id(1)   # reduction ("arbitrary") axis

    @pl.when(i == 0)
    def _init():
        acc_ref[...] = jnp.zeros_like(acc_ref)

    # Logical (unclamped) starting row of this grid step.  The index_map clamps
    # phantom blocks of an uneven core split onto the last real block; here we
    # keep the logical value so those blocks mask to zero.
    row0 = (c * blocks_per_core + i) * tb

    def accumulate(d):
        dd = d * d
        # (tb,128)->(tb//8,8,128) is layout-preserving; summing the leading
        # axis is pure vreg adds (VPU), no cross-lane work until the very end.
        acc_ref[...] += jnp.sum(dd.reshape(tb // 8, 8, _LANE), axis=0)

    needs_mask = row0 + tb > full_rows

    @pl.when(jnp.logical_not(needs_mask))
    def _full_block():
        accumulate(r_ref[...].astype(jnp.float32) -
                   t_ref[...].astype(jnp.float32))

    @pl.when(needs_mask)
    def _tail_block():
        rows_id = lax.broadcasted_iota(jnp.int32, (tb, _LANE), 0) + row0
        lane_id = lax.broadcasted_iota(jnp.int32, (tb, _LANE), 1)
        valid = (rows_id < full_rows) | ((rows_id == full_rows) & (lane_id < rem))
        d = r_ref[...].astype(jnp.float32) - t_ref[...].astype(jnp.float32)
        accumulate(jnp.where(valid, d, 0.0))

    @pl.when(i == blocks_per_core - 1)
    def _finalize():
        out_ref[...] = acc_ref[...].reshape(out_ref.shape)


def mse_pallas(recon, target, *, block_rows=_BLOCK_ROWS, num_cores=_NUM_CORES):
    """mean((recon - target)**2) as a pipelined, bandwidth-bound Pallas reduction."""
    assert recon.shape == target.shape, "recon/target must have the same shape"
    n = recon.size
    assert n > 0

    r = recon.reshape(-1)
    t = target.reshape(-1)

    full_rows, rem = divmod(n, _LANE)
    rows = full_rows + (1 if rem else 0)

    if rows <= block_rows:
        # Small input: single block on a single core.  Round the row count up
        # to a sublane multiple (tiny zero pad; the in-kernel mask excludes it).
        rows8 = max(8, ((rows + 7) // 8) * 8)
        pad = rows8 * _LANE - n
        if pad:
            r = jnp.pad(r, (0, pad))
            t = jnp.pad(t, (0, pad))
        rows = rows8
        tb = rows8
        nc = 1
    else:
        # Large input: stream multiple-of-8 row tiles with NO tile padding --
        # the partial tail block is masked in-kernel.  Only a <128-element lane
        # pad is needed when numel isn't a multiple of 128 (ragged shapes).
        lane_pad = (_LANE - rem) % _LANE
        if lane_pad:
            r = jnp.pad(r, (0, lane_pad))
            t = jnp.pad(t, (0, lane_pad))
        tb = block_rows
        nc = num_cores

    r = r.reshape(rows, _LANE)
    t = t.reshape(rows, _LANE)

    total_blocks = pl.cdiv(rows, tb)
    nc = max(1, min(nc, total_blocks))
    blocks_per_core = pl.cdiv(total_blocks, nc)

    def in_index_map(c, i):
        # Clamp phantom blocks (uneven split across cores) onto the last real
        # block; the kernel masks their contribution to zero.
        return (jnp.minimum(c * blocks_per_core + i, total_blocks - 1), 0)

    kernel = functools.partial(
        _mse_kernel, tb=tb, blocks_per_core=blocks_per_core,
        full_rows=full_rows, rem=rem)

    partials = pl.pallas_call(
        kernel,
        out_shape=jax.ShapeDtypeStruct((nc, 8, _LANE), jnp.float32),
        grid_spec=pltpu.PrefetchScalarGridSpec(
            num_scalar_prefetch=0,
            grid=(nc, blocks_per_core),
            in_specs=[
                pl.BlockSpec((tb, _LANE), in_index_map),
                pl.BlockSpec((tb, _LANE), in_index_map),
            ],
            out_specs=pl.BlockSpec((1, 8, _LANE), lambda c, i: (c, 0, 0)),
            scratch_shapes=[pltpu.VMEM((8, _LANE), jnp.float32)],
        ),
        compiler_params=pltpu.CompilerParams(
            dimension_semantics=("parallel", "arbitrary"),
            vmem_limit_bytes=32 * 1024 * 1024,
        ),
    )(r, t)

    # Tiny epilogue: <= nc*8*128 f32 adds + one scale by 1/N.
    return jnp.sum(partials) * jnp.float32(1.0 / n)


def mse_ref(recon, target):
    """Pure-JAX reference matching torch.nn.MSELoss(reduction='mean')."""
    d = recon.astype(jnp.float32) - target.astype(jnp.float32)
    return jnp.mean(d * d)


if __name__ == "__main__":
    key = jax.random.PRNGKey(0)
    k1, k2, k3, k4, k5, k6, k7, k8 = jax.random.split(key, 8)

    # Shapes implied by the module: recon/target of identical shape, e.g. [B, C, H, W].
    recon = jax.random.normal(k1, (2, 4, 16, 16), dtype=jnp.float32)
    target = jax.random.normal(k2, (2, 4, 16, 16), dtype=jnp.float32)
    out = jax.block_until_ready(mse_pallas(recon, target))
    ref = jax.block_until_ready(mse_ref(recon, target))
    np.testing.assert_allclose(np.asarray(out), np.asarray(ref), rtol=1e-5, atol=1e-6)

    # Ragged element count exercises the lane-pad + in-kernel mask path.
    recon2 = jax.random.normal(k3, (3, 5, 7), dtype=jnp.float32)
    target2 = jax.random.normal(k4, (3, 5, 7), dtype=jnp.float32)
    out2 = jax.block_until_ready(mse_pallas(recon2, target2))
    ref2 = jax.block_until_ready(mse_ref(recon2, target2))
    np.testing.assert_allclose(np.asarray(out2), np.asarray(ref2), rtol=1e-5, atol=1e-6)

    # Small block_rows to exercise the multi-block, two-core split with a
    # masked partial tail block and a clamped phantom block (still tiny data).
    recon3 = jax.random.normal(k5, (5, 8, 128), dtype=jnp.float32)
    target3 = jax.random.normal(k6, (5, 8, 128), dtype=jnp.float32)
    out3 = jax.block_until_ready(mse_pallas(recon3, target3, block_rows=16))
    ref3 = jax.block_until_ready(mse_ref(recon3, target3))
    np.testing.assert_allclose(np.asarray(out3), np.asarray(ref3), rtol=1e-5, atol=1e-6)

    # Multi-block AND lane-ragged at once.
    recon4 = jax.random.normal(k7, (41, 100), dtype=jnp.float32)
    target4 = jax.random.normal(k8, (41, 100), dtype=jnp.float32)
    out4 = jax.block_until_ready(mse_pallas(recon4, target4, block_rows=16))
    ref4 = jax.block_until_ready(mse_ref(recon4, target4))
    np.testing.assert_allclose(np.asarray(out4), np.asarray(ref4), rtol=1e-5, atol=1e-6)

    print("KERNEL_OK")
</pallas_src>

<mosaic_0001>
module attributes {stable_mosaic.version = 11 : i64} {
  func.func @_mse_kernel(%arg0: i32, %arg1: i32, %arg2: memref<16x128xf32, #tpu.memory_space<vmem>>, %arg3: memref<16x128xf32, #tpu.memory_space<vmem>>, %arg4: memref<1x8x128xf32, #tpu.memory_space<vmem>>, %arg5: memref<8x128xf32, #tpu.memory_space<vmem>>) attributes {dimension_semantics = [#tpu.dimension_semantics<parallel>, #tpu.dimension_semantics<arbitrary>], iteration_bounds = array<i64: 1, 1>, scalar_prefetch = 0 : i64, scratch_operands = 1 : i64, tpu.core_type = #tpu.core_type<tc>, window_params = [{transform_indices = @transform_0, window_bounds = array<i64: 16, 128>}, {transform_indices = @transform_1, window_bounds = array<i64: 16, 128>}, {transform_indices = @transform_2, window_bounds = array<i64: 1, 8, 128>}]} {
    %c0_i32 = arith.constant 0 : i32
    %0 = arith.cmpi eq, %arg1, %c0_i32 : i32
    %1 = arith.extui %0 : i1 to i32
    %c0_i32_0 = arith.constant 0 : i32
    %2 = arith.cmpi ne, %1, %c0_i32_0 : i32
    scf.if %2 {
      %cst = arith.constant 0.000000e+00 : f32
      %16 = vector.broadcast %cst : f32 to vector<8x128xf32>
      %c0 = arith.constant 0 : index
      %c0_7 = arith.constant 0 : index
      %17 = vector.load %arg5[%c0, %c0_7] : memref<8x128xf32, #tpu.memory_space<vmem>>, vector<8x128xf32>
      tpu.vector_store %arg5[%c0, %c0_7], %16 {strides = array<i32>} : memref<8x128xf32, #tpu.memory_space<vmem>>, vector<8x128xf32>,
    } else {
    }
    %c1_i32 = arith.constant 1 : i32
    %3 = arith.muli %arg0, %c1_i32 : i32
    %4 = arith.addi %3, %arg1 : i32
    %c16_i32 = arith.constant 16 : i32
    %5 = arith.muli %4, %c16_i32 : i32
    %c16_i32_1 = arith.constant 16 : i32
    %6 = arith.addi %5, %c16_i32_1 : i32
    %c16_i32_2 = arith.constant 16 : i32
    %7 = arith.cmpi sgt, %6, %c16_i32_2 : i32
    %true = arith.constant true
    %8 = arith.xori %7, %true : i1
    %9 = arith.extui %8 : i1 to i32
    %c0_i32_3 = arith.constant 0 : i32
    %10 = arith.cmpi ne, %9, %c0_i32_3 : i32
    scf.if %10 {
      %c0 = arith.constant 0 : index
      %c0_7 = arith.constant 0 : index
      %16 = vector.load %arg2[%c0, %c0_7] : memref<16x128xf32, #tpu.memory_space<vmem>>, vector<16x128xf32>
      %c0_8 = arith.constant 0 : index
      %c0_9 = arith.constant 0 : index
      %17 = vector.load %arg3[%c0_8, %c0_9] : memref<16x128xf32, #tpu.memory_space<vmem>>, vector<16x128xf32>
      %18 = arith.subf %16, %17 : vector<16x128xf32>
      %19 = arith.mulf %18, %18 : vector<16x128xf32>
      %c0_10 = arith.constant 0 : index
      %c0_11 = arith.constant 0 : index
      %20 = vector.load %arg5[%c0_10, %c0_11] : memref<8x128xf32, #tpu.memory_space<vmem>>, vector<8x128xf32>
      %21 = vector.shape_cast %19 : vector<16x128xf32> to vector<2x8x128xf32>
      %cst = arith.constant dense<0.000000e+00> : vector<8x128xf32>
      %22 = vector.multi_reduction <add>, %21, %cst [0] : vector<2x8x128xf32> to vector<8x128xf32>
      %23 = arith.addf %20, %22 : vector<8x128xf32>
      %c0_12 = arith.constant 0 : index
      %c0_13 = arith.constant 0 : index
      %24 = vector.load %arg5[%c0_12, %c0_13] : memref<8x128xf32, #tpu.memory_space<vmem>>, vector<8x128xf32>
      tpu.vector_store %arg5[%c0_12, %c0_13], %23 {strides = array<i32>} : memref<8x128xf32, #tpu.memory_space<vmem>>, vector<8x128xf32>,
    } else {
    }
    %11 = arith.extui %7 : i1 to i32
    %c0_i32_4 = arith.constant 0 : i32
    %12 = arith.cmpi ne, %11, %c0_i32_4 : i32
    scf.if %12 {
      %16 = tpu.iota {dimensions = array<i32: 0>} : vector<16x128xi32>
      %17 = vector.broadcast %5 : i32 to vector<16x128xi32>
      %18 = arith.addi %16, %17 : vector<16x128xi32>
      %19 = tpu.iota {dimensions = array<i32: 1>} : vector<16x128xi32>
      %c16_i32_7 = arith.constant 16 : i32
      %20 = vector.broadcast %c16_i32_7 : i32 to vector<16x128xi32>
      %21 = arith.cmpi slt, %18, %20 : vector<16x128xi32>
      %c16_i32_8 = arith.constant 16 : i32
      %22 = vector.broadcast %c16_i32_8 : i32 to vector<16x128xi32>
      %23 = arith.cmpi eq, %18, %22 : vector<16x128xi32>
      %c0_i32_9 = arith.constant 0 : i32
      %24 = vector.broadcast %c0_i32_9 : i32 to vector<16x128xi32>
      %25 = arith.cmpi slt, %19, %24 : vector<16x128xi32>
      %26 = arith.andi %23, %25 : vector<16x128xi1>
      %27 = arith.ori %21, %26 : vector<16x128xi1>
      %c0 = arith.constant 0 : index
      %c0_10 = arith.constant 0 : index
      %28 = vector.load %arg2[%c0, %c0_10] : memref<16x128xf32, #tpu.memory_space<vmem>>, vector<16x128xf32>
      %c0_11 = arith.constant 0 : index
      %c0_12 = arith.constant 0 : index
      %29 = vector.load %arg3[%c0_11, %c0_12] : memref<16x128xf32, #tpu.memory_space<vmem>>, vector<16x128xf32>
      %30 = arith.subf %28, %29 : vector<16x128xf32>
      %cst = arith.constant 0.000000e+00 : f32
      %31 = vector.broadcast %cst : f32 to vector<16x128xf32>
      %32 = arith.select %27, %30, %31 : vector<16x128xi1>, vector<16x128xf32>
      %33 = arith.mulf %32, %32 : vector<16x128xf32>
      %c0_13 = arith.constant 0 : index
      %c0_14 = arith.constant 0 : index
      %34 = vector.load %arg5[%c0_13, %c0_14] : memref<8x128xf32, #tpu.memory_space<vmem>>, vector<8x128xf32>
      %35 = vector.shape_cast %33 : vector<16x128xf32> to vector<2x8x128xf32>
      %cst_15 = arith.constant dense<0.000000e+00> : vector<8x128xf32>
      %36 = vector.multi_reduction <add>, %35, %cst_15 [0] : vector<2x8x128xf32> to vector<8x128xf32>
      %37 = arith.addf %34, %36 : vector<8x128xf32>
      %c0_16 = arith.constant 0 : index
      %c0_17 = arith.constant 0 : index
      %38 = vector.load %arg5[%c0_16, %c0_17] : memref<8x128xf32, #tpu.memory_space<vmem>>, vector<8x128xf32>
      tpu.vector_store %arg5[%c0_16, %c0_17], %37 {strides = array<i32>} : memref<8x128xf32, #tpu.memory_space<vmem>>, vector<8x128xf32>,
    } else {
    }
    %c0_i32_5 = arith.constant 0 : i32
    %13 = arith.cmpi eq, %arg1, %c0_i32_5 : i32
    %14 = arith.extui %13 : i1 to i32
    %c0_i32_6 = arith.constant 0 : i32
    %15 = arith.cmpi ne, %14, %c0_i32_6 : i32
    scf.if %15 {
      %c0 = arith.constant 0 : index
      %c0_7 = arith.constant 0 : index
      %16 = vector.load %arg5[%c0, %c0_7] : memref<8x128xf32, #tpu.memory_space<vmem>>, vector<8x128xf32>
      %17 = vector.shape_cast %16 : vector<8x128xf32> to vector<1x8x128xf32>
      %c0_8 = arith.constant 0 : index
      %c0_9 = arith.constant 0 : index
      %c0_10 = arith.constant 0 : index
      %18 = vector.load %arg4[%c0_8, %c0_9, %c0_10] : memref<1x8x128xf32, #tpu.memory_space<vmem>>, vector<1x8x128xf32>
      tpu.vector_store %arg4[%c0_8, %c0_9, %c0_10], %17 {strides = array<i32>} : memref<1x8x128xf32, #tpu.memory_space<vmem>>, vector<1x8x128xf32>,
    } else {
    }
    return
  }
  func.func @transform_0(%arg0: i32, %arg1: i32) -> (i32, i32) {
    %c1_i32 = arith.constant 1 : i32
    %0 = arith.muli %arg0, %c1_i32 : i32
    %1 = arith.addi %0, %arg1 : i32
    %c0_i32 = arith.constant 0 : i32
    %2 = arith.minsi %1, %c0_i32 : i32
    %c0_i32_0 = arith.constant 0 : i32
    %c0_i32_1 = arith.constant 0 : i32
    return %2, %c0_i32_0 : i32, i32
  }
  func.func @transform_1(%arg0: i32, %arg1: i32) -> (i32, i32) {
    %c1_i32 = arith.constant 1 : i32
    %0 = arith.muli %arg0, %c1_i32 : i32
    %1 = arith.addi %0, %arg1 : i32
    %c0_i32 = arith.constant 0 : i32
    %2 = arith.minsi %1, %c0_i32 : i32
    %c0_i32_0 = arith.constant 0 : i32
    %c0_i32_1 = arith.constant 0 : i32
    return %2, %c0_i32_0 : i32, i32
  }
  func.func @transform_2(%arg0: i32, %arg1: i32) -> (i32, i32, i32) {
    %c0_i32 = arith.constant 0 : i32
    %c0_i32_0 = arith.constant 0 : i32
    %c0_i32_1 = arith.constant 0 : i32
    return %arg0, %c0_i32, %c0_i32_0 : i32, i32, i32
  }
}

</mosaic_0001>

<bundles_post_ra>
// kernel: tpu_custom_call.1
= control target key start
LH: loop header
LB: loop body
LE: loop exit
PB: predicated region body
PF: predicated region fallthrough
CT: control target
= control target key end

     0   :  { %7 = vsyncpa [#allocation4], 0  ;;  %s277_s0 = inlined_call_operand.hbm [shape: f32[16,128], index: 0, kind: input, shape index: {}]   ;;  %s278_s1 = inlined_call_operand.hbm [shape: f32[16,128], index: 1, kind: input, shape index: {}]   ;;  %s279_s2 = inlined_call_operand.hbm [shape: f32[1,8,128], index: 2, kind: output, shape index: {}]  }
   0x1   :  { %8 = vsyncpa [#allocation7], 0 }
   0x2   :  { %9 = vsyncpa [#allocation5], 0  ;;  %s221_s9 = smov [#allocation3]   ;;  %s149_s13 = scalar_lea.hbm %s277_s0, 256 }
   0x3   :  { %s21_s10 = sshll.u32 %s221_s9, 4  ;;  %p150_p0 = scmp.ne.s32.totalorder %s277_s0, %s149_s13  ;;  %s22_s10 = int_to_ptr.vmem [resolvable:$true] %s21_s10 }
   0x4   :  { %p153_p1 = scmp.lt.u32.totalorder %s149_s13, %s277_s0 }
   0x6   :  { %p155_p2 = pnand %p153_p1, %p150_p0 }
   0x8   :  { %158 = shalt.err (!%p155_p2)
}
   0x9   :  { %s159_s18 = scalar_lea.vmem %s22_s10, 256  ;;  %p164_p4 = scmp.lt.s32.totalorder %s22_s10, %s22_s10 }
   0xa   :  { %p160_p3 = scmp.ne.s32.totalorder %s22_s10, %s159_s18  ;;  %p165_p5 = scmp.lt.s32.totalorder %s159_s18, %s159_s18 }
   0xc   :  { %p166_p6 = por %p165_p5, %p164_p4 }
   0xe   :  { %p167_p7 = pnand %p166_p6, %p160_p3 }
  0x10   :  { %170 = shalt.err (!%p167_p7)
}
  0x11   :  { %s222_s19 = smov 128   ;;  %s223_s20 = smov 8  }
  0x12   :  { %27 = dma.hbm_to_vmem [thread:$0]  %s277_s0, 256, %s22_s10, [#allocation4], %s222_s19, %s222_s19, %s223_s20  }
  0x13   :  { %s224_s23 = smov [#allocation6]   ;;  %s171_s27 = scalar_lea.hbm %s278_s1, 256 }
  0x14   :  { %s39_s24 = sshll.u32 %s224_s23, 4  ;;  %p172_p8 = scmp.ne.s32.totalorder %s278_s1, %s171_s27  ;;  %s40_s24 = int_to_ptr.vmem [resolvable:$true] %s39_s24 }
  0x15   :  { %p175_p9 = scmp.lt.u32.totalorder %s171_s27, %s278_s1 }
  0x17   :  { %p177_p10 = pnand %p175_p9, %p172_p8 }
  0x19   :  { %180 = shalt.err (!%p177_p10)
}
  0x1a   :  { %s181_s4 = scalar_lea.vmem %s40_s24, 256  ;;  %p186_p12 = scmp.lt.s32.totalorder %s40_s24, %s40_s24 }
  0x1b   :  { %p182_p11 = scmp.ne.s32.totalorder %s40_s24, %s181_s4  ;;  %p187_p13 = scmp.lt.s32.totalorder %s181_s4, %s181_s4 }
  0x1d   :  { %p188_p0 = por %p187_p13, %p186_p12 }
  0x1f   :  { %p189_p1 = pnand %p188_p0, %p182_p11 }
  0x21   :  { %192 = shalt.err (!%p189_p1)
}
  0x22   :  { %45 = dma.hbm_to_vmem [thread:$0]  %s278_s1, 256, %s40_s24, [#allocation7], %s222_s19, %s222_s19, %s223_s20  }
  0x23   :  { %215 = dma.done.wait [#allocation4], 256  }
  0x24   :  { %216 = vsyncadd [#allocation4], 4294967040 }
  0x25   :  { %217 = dma.done.wait [#allocation7], 256  }
  0x26   :  { %218 = vsyncadd [#allocation7], 4294967040  ;;  %v73_v0 = vld [vmem:[#allocation3] sm:$0xff]  ;;  %v74_v1 = vld [vmem:[#allocation3 + $0x8] sm:$0xff]  ;;  %s225_s6 = smov [#allocation8]  }
  0x27   :  { %v75_v2 = vld [vmem:[#allocation6] sm:$0xff]  ;;  %v76_v3 = vld [vmem:[#allocation6 + $0x8] sm:$0xff]  ;;  %s130_s7 = sshll.u32 %s225_s6, 4  ;;  %s131_s7 = int_to_ptr.vmem [resolvable:$true] %s130_s7 }
  0x28   :  { %v77_v4 = vsub.f32 %v73_v0, %v75_v2  ;;  %v78_v5 = vsub.f32 %v74_v1, %v76_v3  ;;  %s193_s8 = scalar_lea.vmem %s131_s7, 128  ;;  %p198_p3 = scmp.lt.s32.totalorder %s131_s7, %s131_s7 }
  0x29   :  { %p194_p2 = scmp.ne.s32.totalorder %s131_s7, %s193_s8  ;;  %p199_p4 = scmp.lt.s32.totalorder %s193_s8, %s193_s8 }
  0x2a   :  { %v79_v6 = vmul.f32 %v77_v4, %v77_v4  ;;  %v80_v7 = vmul.f32 %v78_v5, %v78_v5 }
  0x2b   :  { %p200_p5 = por %p199_p4, %p198_p3 }
  0x2c   :  { %v82_v8 = vadd.f32 %v80_v7, %v79_v6 }
  0x2d   :  { %p201_p6 = pnand %p200_p5, %p194_p2 }
  0x2e   :  { %123 = vst [vmem:[#allocation8] sm:$0xff] %v82_v8 }
  0x2f   :  { %204 = shalt.err (!%p201_p6)
}
  0x30   :  { %s205_s10 = scalar_lea.hbm %s279_s2, 128 }
  0x31   :  { %p206_p7 = scmp.ne.s32.totalorder %s279_s2, %s205_s10  ;;  %p209_p8 = scmp.lt.u32.totalorder %s205_s10, %s279_s2 }
  0x33   :  { %p211_p9 = pnand %p209_p8, %p206_p7 }
  0x35   :  { %214 = shalt.err (!%p211_p9)
}
  0x36   :  { %133 = dma.vmem_to_hbm [thread:$0]  %s131_s7, 128, %s279_s2, [#allocation5]  }
  0x37   :  { %219 = dma.done.wait [#allocation5], 128  }
  0x38   :  { %220 = vsyncadd [#allocation5], 4294967168 }
  0x39   :  { %137 = vsyncpa [#allocation4], 1 }
  0x3a   :  { %138 = vsyncpa [#allocation7], 1 }
  0x3b   :  { %139 = vsyncpa [#allocation5], 1 }

</bundles_post_ra>
